<compile_context>
chip_gen: v6e
topology: v6e:2x2x1
jax: 0.10.0
libtpu: 0.0.40
codegen_flags: <defaults>
</compile_context>

<pallas_src>
import functools

import jax
import jax.numpy as jnp
from jax.experimental import pallas as pl
from jax.experimental.pallas import tpu as pltpu


# ----------------------------- config (synthetic) -----------------------------
HIDDEN_SIZE = 32
MAX_TOKEN_TYPE_EMBEDDINGS = 7          # embedding table has 7 + 1 rows, padding_idx = 7
NUM_SPECIAL_TOKENS = 5
PROT_EMB_TOKEN_ID = 4
PAD_TOKEN_ID = 0
LAYER_NORM_EPS = 1e-12
HIDDEN_DROPOUT_PROB = 0.1              # eval mode -> no-op
# TODO(synk): dropout is identity here (module in eval mode); training-mode RNG dropout
#             could be added with pltpu.prng_seed / prng_random_bits if needed.

LANES = 128                                   # TPU lane width
NUM_TT = MAX_TOKEN_TYPE_EMBEDDINGS + 1        # 8 token-type rows (last one zeroed)
BIAS_ROW = NUM_SPECIAL_TOKENS + NUM_TT        # per-segment table row holding the linear bias


def _round_up(a, m):
    return pl.cdiv(a, m) * m


# --------------------------------- kernel -------------------------------------
def bacformer_embeddings_kernel(
    ids_ref,      # (TMp, 2*packs) i32  [sp_gid_0..3 | tt_gid_0..3] per packed row
    x_ref,        # (TMp, 128)     f32  4 logical rows packed per vreg row
    consts_ref,   # (328, 128)     f32  [Wt block-diag | seg-ones | gather table | gamma/beta]
    out_ref,      # (TMp, 128)     f32
    *,
    d: int,          # hidden size per segment (32)
    packs: int,      # logical rows per packed row (4)
    nseg: int,       # gather-table rows per segment (16)
    eps: float,
):
    xp = x_ref[...]                                          # (TMp, 128)
    tmp, lanes = xp.shape
    k_tab = packs * nseg                                     # 64

    # --- static views into the merged constant operand (all row offsets 8-aligned) ---
    wt_block = consts_ref[0:lanes, :]                        # (128, 128) block-diag W^T
    seg_ones = consts_ref[lanes:2 * lanes, :]                # (128, 128) block-diag ones
    tab = consts_ref[2 * lanes:2 * lanes + k_tab, :]         # (64, 128) stacked emb/bias tables
    extra = consts_ref[2 * lanes + k_tab:2 * lanes + k_tab + 8, :]   # (8, 128)
    gamma = extra[0:1, :]
    beta = extra[1:2, :]

    lane_iota = jax.lax.broadcasted_iota(jnp.int32, (1, lanes), 1)   # (1,128) only

    # ---- per-lane is_prot mask: per-segment compare column + select tree ----
    # sp gather id equals the per-segment bias row index iff mask == prot_emb_token_id.
    cols = [
        (ids_ref[:, s:s + 1] == (s * nseg + BIAS_ROW)).astype(jnp.float32)   # (TMp,1)
        for s in range(packs)
    ]

    def spread(cs, lo):
        if len(cs) == 1:
            return cs[0]
        mid = len(cs) // 2
        left = spread(cs[:mid], lo)
        right = spread(cs[mid:], lo + mid)
        return jnp.where(lane_iota < (lo + mid) * d, left, right)

    is_prot = jnp.broadcast_to(spread(cols, 0), (tmp, lanes))         # (TMp,128)

    # ---- nn.Linear per 32-lane segment, with is_prot folded into the LHS (exact,
    #      since wt_block is block-diagonal and is_prot is constant per segment) ----
    xp_masked = is_prot * xp
    y_lin = jnp.dot(xp_masked, wt_block, preferred_element_type=jnp.float32)

    # ---- fused gather: special-token emb (non-prot), linear bias (prot) and
    #      token-type emb via one two-hot matmul against the stacked table ----
    tab_iota = jax.lax.broadcasted_iota(jnp.int32, (1, k_tab), 1)
    onehot = jnp.zeros((tmp, k_tab), jnp.float32)
    for c in range(2 * packs):                               # 4 sp ids + 4 tt ids
        onehot = onehot + (tab_iota == ids_ref[:, c:c + 1]).astype(jnp.float32)
    gathered = jnp.dot(onehot, tab, preferred_element_type=jnp.float32)   # (TMp, 128)

    y = y_lin + gathered

    # ---- segmented LayerNorm: two INDEPENDENT block-ones reductions (no serial chain) ----
    inv_d = jnp.float32(1.0 / d)
    sum_y = jnp.dot(y, seg_ones, preferred_element_type=jnp.float32)
    sum_y2 = jnp.dot(y * y, seg_ones, preferred_element_type=jnp.float32)
    mean = sum_y * inv_d
    var = jnp.maximum(sum_y2 * inv_d - mean * mean, 0.0)
    rstd = jax.lax.rsqrt(var + eps)
    out_ref[...] = (y - mean) * (rstd * gamma) + beta
    # dropout: eval mode => identity


# -------------------------------- wrapper --------------------------------------
def bacformer_embeddings(
    protein_embeddings,      # (B, S, D) f32
    special_tokens_mask,     # (B, S)    i32
    token_type_ids,          # (B, S)    i32
    params,                  # dict of weights
    *,
    max_tile_packed=2048,    # 2048 packed rows == 8192 logical rows per grid step
):
    B, S, D = protein_embeddings.shape
    assert LANES % D == 0, "this synthetic config assumes hidden_size divides 128"
    packs = LANES // D                                           # logical rows per packed row
    nseg = _round_up(NUM_SPECIAL_TOKENS + NUM_TT + 1, 8)         # 16 table rows per segment
    N = B * S

    # ---- packed-row tile: balance grid steps, big tiles, minimal padding ----
    np_rows = pl.cdiv(N, packs)
    steps = pl.cdiv(np_rows, max_tile_packed)
    tile_p = _round_up(pl.cdiv(np_rows, steps), 8)
    np_pad = _round_up(np_rows, tile_p)
    n_pad_rows = np_pad * packs
    pad = n_pad_rows - N

    # ---- flatten + pad logical rows (padded rows: x=0, mask=prot, ttype=padding_idx) ----
    x_flat = protein_embeddings.reshape(N, D).astype(jnp.float32)
    mask_flat = special_tokens_mask.reshape(N).astype(jnp.int32)
    ttype_flat = token_type_ids.reshape(N).astype(jnp.int32)
    if pad:
        x_flat = jnp.concatenate([x_flat, jnp.zeros((pad, D), jnp.float32)], axis=0)
        mask_flat = jnp.concatenate(
            [mask_flat, jnp.full((pad,), PROT_EMB_TOKEN_ID, jnp.int32)])
        ttype_flat = jnp.concatenate(
            [ttype_flat, jnp.full((pad,), MAX_TOKEN_TYPE_EMBEDDINGS, jnp.int32)])

    x_packed = x_flat.reshape(np_pad, LANES)                     # free, row-major

    # ---- per-row gather ids (global index into the stacked per-segment table) ----
    # prot rows point the "special token" slot at the per-segment bias row.
    seg = jnp.arange(n_pad_rows, dtype=jnp.int32) % packs
    sp_gid = jnp.where(mask_flat == PROT_EMB_TOKEN_ID,
                       seg * nseg + BIAS_ROW, seg * nseg + mask_flat)
    tt_gid = seg * nseg + NUM_SPECIAL_TOKENS + ttype_flat
    ids = jnp.concatenate(
        [sp_gid.reshape(np_pad, packs), tt_gid.reshape(np_pad, packs)], axis=1
    ).astype(jnp.int32)                                          # (np_pad, 8)

    # ---- merged constant operand (f32): block-diag W^T | block-ones | table | gamma/beta ----
    wt = params["linear_w"].T.astype(jnp.float32)                             # (D, D)
    eye_p = jnp.eye(packs, dtype=jnp.float32)
    wt_block = jnp.kron(eye_p, wt)                                            # (128, 128)
    seg_ones = jnp.kron(eye_p, jnp.ones((D, D), jnp.float32))                 # (128, 128)

    tt_tab = params["token_type_emb"].astype(jnp.float32)
    tt_tab = tt_tab.at[MAX_TOKEN_TYPE_EMBEDDINGS].set(0.0)                    # padding_idx row
    seg_tab = jnp.zeros((nseg, D), jnp.float32)
    seg_tab = seg_tab.at[:NUM_SPECIAL_TOKENS].set(params["special_tok_emb"].astype(jnp.float32))
    seg_tab = seg_tab.at[NUM_SPECIAL_TOKENS:NUM_SPECIAL_TOKENS + NUM_TT].set(tt_tab)
    seg_tab = seg_tab.at[BIAS_ROW].set(params["linear_b"].astype(jnp.float32))
    tab = jnp.kron(eye_p, seg_tab)                                            # (64, 128)

    gamma_t = jnp.tile(params["ln_gamma"].astype(jnp.float32), packs)[None, :]
    beta_t = jnp.tile(params["ln_beta"].astype(jnp.float32), packs)[None, :]
    extra = jnp.concatenate(
        [gamma_t, beta_t, jnp.zeros((6, LANES), jnp.float32)], axis=0)        # (8, 128)

    consts = jnp.concatenate([wt_block, seg_ones, tab, extra], axis=0)        # (328, 128)

    kernel = functools.partial(
        bacformer_embeddings_kernel,
        d=D, packs=packs, nseg=nseg, eps=LAYER_NORM_EPS,
    )

    grid = (np_pad // tile_p,)
    out_packed = pl.pallas_call(
        kernel,
        out_shape=jax.ShapeDtypeStruct((np_pad, LANES), jnp.float32),
        grid_spec=pltpu.PrefetchScalarGridSpec(
            num_scalar_prefetch=0,
            grid=grid,
            in_specs=[
                pl.BlockSpec((tile_p, 2 * packs), lambda i: (i, 0)),   # ids
                pl.BlockSpec((tile_p, LANES), lambda i: (i, 0)),       # packed x
                pl.BlockSpec(consts.shape, lambda i: (0, 0)),          # constants (not re-DMA'd)
            ],
            out_specs=pl.BlockSpec((tile_p, LANES), lambda i: (i, 0)),
        ),
        compiler_params=pltpu.CompilerParams(
            dimension_semantics=("parallel",),
        ),
    )(ids, x_packed, consts)

    out = out_packed.reshape(n_pad_rows, D)[:N]
    return out.reshape(B, S, D)


# ------------------------------ pure-JAX reference ------------------------------
def bacformer_embeddings_ref(protein_embeddings, special_tokens_mask, token_type_ids, params):
    x = protein_embeddings.astype(jnp.float32)
    y = x @ params["linear_w"].T + params["linear_b"]
    sp_emb = params["special_tok_emb"][special_tokens_mask]
    y = jnp.where((special_tokens_mask == PROT_EMB_TOKEN_ID)[..., None], y, sp_emb)
    tt_tab = params["token_type_emb"].at[MAX_TOKEN_TYPE_EMBEDDINGS].set(0.0)
    y = y + tt_tab[token_type_ids]
    mean = jnp.mean(y, axis=-1, keepdims=True)
    var = jnp.mean((y - mean) ** 2, axis=-1, keepdims=True)
    y = (y - mean) / jnp.sqrt(var + LAYER_NORM_EPS)
    return y * params["ln_gamma"] + params["ln_beta"]


# ----------------------------------- main ---------------------------------------
if __name__ == "__main__":
    key = jax.random.PRNGKey(0)
    k_x, k_w, k_b, k_sp, k_tt, k_mask, k_ttid = jax.random.split(key, 7)

    B, S, D = 2, 8, HIDDEN_SIZE

    params = {
        "linear_w": jax.random.normal(k_w, (D, D), jnp.float32) * 0.05,
        "linear_b": jax.random.normal(k_b, (D,), jnp.float32) * 0.05,
        "special_tok_emb": jax.random.normal(k_sp, (NUM_SPECIAL_TOKENS, D), jnp.float32) * 0.05,
        "token_type_emb": jax.random.normal(
            k_tt, (MAX_TOKEN_TYPE_EMBEDDINGS + 1, D), jnp.float32) * 0.05,
        "ln_gamma": jnp.ones((D,), jnp.float32),
        "ln_beta": jnp.zeros((D,), jnp.float32),
    }

    protein_embeddings = jax.random.normal(k_x, (B, S, D), jnp.float32)
    special_tokens_mask = jax.random.randint(k_mask, (B, S), 0, NUM_SPECIAL_TOKENS, jnp.int32)
    token_type_ids = jax.random.randint(
        k_ttid, (B, S), 0, MAX_TOKEN_TYPE_EMBEDDINGS + 1, jnp.int32)

    out = bacformer_embeddings(protein_embeddings, special_tokens_mask, token_type_ids, params)
    out = jax.block_until_ready(out)

    ref = bacformer_embeddings_ref(protein_embeddings, special_tokens_mask, token_type_ids, params)
    assert out.shape == (B, S, D)
    assert jnp.allclose(out, ref, atol=2e-4, rtol=2e-4), "mismatch vs reference"

    print("KERNEL_OK")
</pallas_src>

<mosaic_0001>
module attributes {stable_mosaic.version = 11 : i64} {
  func.func @bacformer_embeddings_kernel(%arg0: i32, %arg1: memref<8x8xi32, #tpu.memory_space<vmem>>, %arg2: memref<8x128xf32, #tpu.memory_space<vmem>>, %arg3: memref<328x128xf32, #tpu.memory_space<vmem>>, %arg4: memref<8x128xf32, #tpu.memory_space<vmem>>) attributes {dimension_semantics = [#tpu.dimension_semantics<parallel>], iteration_bounds = array<i64: 1>, scalar_prefetch = 0 : i64, scratch_operands = 0 : i64, tpu.core_type = #tpu.core_type<tc>, window_params = [{transform_indices = @transform_0, window_bounds = array<i64: 8, 8>}, {transform_indices = @transform_1, window_bounds = array<i64: 8, 128>}, {pipeline_mode = #tpu.pipeline_mode<synchronous>, transform_indices = @transform_2, window_bounds = array<i64: 328, 128>}, {transform_indices = @transform_3, window_bounds = array<i64: 8, 128>}]} {
    %c0 = arith.constant 0 : index
    %c0_0 = arith.constant 0 : index
    %0 = vector.load %arg2[%c0, %c0_0] : memref<8x128xf32, #tpu.memory_space<vmem>>, vector<8x128xf32>
    %c0_1 = arith.constant 0 : index
    %c0_2 = arith.constant 0 : index
    %1 = vector.load %arg3[%c0_1, %c0_2] : memref<328x128xf32, #tpu.memory_space<vmem>>, vector<128x128xf32>
    %c128 = arith.constant 128 : index
    %c0_3 = arith.constant 0 : index
    %2 = vector.load %arg3[%c128, %c0_3] : memref<328x128xf32, #tpu.memory_space<vmem>>, vector<128x128xf32>
    %c256 = arith.constant 256 : index
    %c0_4 = arith.constant 0 : index
    %3 = vector.load %arg3[%c256, %c0_4] : memref<328x128xf32, #tpu.memory_space<vmem>>, vector<64x128xf32>
    %c320 = arith.constant 320 : index
    %c0_5 = arith.constant 0 : index
    %4 = vector.load %arg3[%c320, %c0_5] : memref<328x128xf32, #tpu.memory_space<vmem>>, vector<8x128xf32>
    %5 = vector.extract_strided_slice %4 {offsets = [0, 0], sizes = [1, 128], strides = [1, 1]} : vector<8x128xf32> to vector<1x128xf32>
    %6 = vector.extract_strided_slice %4 {offsets = [1, 0], sizes = [1, 128], strides = [1, 1]} : vector<8x128xf32> to vector<1x128xf32>
    %7 = tpu.iota {dimensions = array<i32: 1>} : vector<1x128xi32>
    %c0_6 = arith.constant 0 : index
    %c0_7 = arith.constant 0 : index
    %8 = vector.load %arg1[%c0_6, %c0_7] : memref<8x8xi32, #tpu.memory_space<vmem>>, vector<8x1xi32>
    %c13_i32 = arith.constant 13 : i32
    %9 = vector.broadcast %c13_i32 : i32 to vector<8x1xi32>
    %10 = arith.cmpi eq, %8, %9 : vector<8x1xi32>
    %11 = arith.extui %10 : vector<8x1xi1> to vector<8x1xi32>
    %12 = arith.sitofp %11 : vector<8x1xi32> to vector<8x1xf32>
    %c0_8 = arith.constant 0 : index
    %c1 = arith.constant 1 : index
    %13 = vector.load %arg1[%c0_8, %c1] : memref<8x8xi32, #tpu.memory_space<vmem>>, vector<8x1xi32>
    %c29_i32 = arith.constant 29 : i32
    %14 = vector.broadcast %c29_i32 : i32 to vector<8x1xi32>
    %15 = arith.cmpi eq, %13, %14 : vector<8x1xi32>
    %16 = arith.extui %15 : vector<8x1xi1> to vector<8x1xi32>
    %17 = arith.sitofp %16 : vector<8x1xi32> to vector<8x1xf32>
    %c0_9 = arith.constant 0 : index
    %c2 = arith.constant 2 : index
    %18 = vector.load %arg1[%c0_9, %c2] : memref<8x8xi32, #tpu.memory_space<vmem>>, vector<8x1xi32>
    %c45_i32 = arith.constant 45 : i32
    %19 = vector.broadcast %c45_i32 : i32 to vector<8x1xi32>
    %20 = arith.cmpi eq, %18, %19 : vector<8x1xi32>
    %21 = arith.extui %20 : vector<8x1xi1> to vector<8x1xi32>
    %22 = arith.sitofp %21 : vector<8x1xi32> to vector<8x1xf32>
    %c0_10 = arith.constant 0 : index
    %c3 = arith.constant 3 : index
    %23 = vector.load %arg1[%c0_10, %c3] : memref<8x8xi32, #tpu.memory_space<vmem>>, vector<8x1xi32>
    %c61_i32 = arith.constant 61 : i32
    %24 = vector.broadcast %c61_i32 : i32 to vector<8x1xi32>
    %25 = arith.cmpi eq, %23, %24 : vector<8x1xi32>
    %26 = arith.extui %25 : vector<8x1xi1> to vector<8x1xi32>
    %27 = arith.sitofp %26 : vector<8x1xi32> to vector<8x1xf32>
    %c32_i32 = arith.constant 32 : i32
    %28 = vector.broadcast %c32_i32 : i32 to vector<1x128xi32>
    %29 = arith.cmpi slt, %7, %28 : vector<1x128xi32>
    %30 = vector.shape_cast %29 : vector<1x128xi1> to vector<1x128xi1>
    %31 = vector.broadcast %30 : vector<1x128xi1> to vector<8x128xi1>
    %32 = vector.shape_cast %12 : vector<8x1xf32> to vector<8x1xf32>
    %33 = vector.broadcast %32 : vector<8x1xf32> to vector<8x128xf32>
    %34 = vector.shape_cast %17 : vector<8x1xf32> to vector<8x1xf32>
    %35 = vector.broadcast %34 : vector<8x1xf32> to vector<8x128xf32>
    %36 = arith.select %31, %33, %35 : vector<8x128xi1>, vector<8x128xf32>
    %c96_i32 = arith.constant 96 : i32
    %37 = vector.broadcast %c96_i32 : i32 to vector<1x128xi32>
    %38 = arith.cmpi slt, %7, %37 : vector<1x128xi32>
    %39 = vector.shape_cast %38 : vector<1x128xi1> to vector<1x128xi1>
    %40 = vector.broadcast %39 : vector<1x128xi1> to vector<8x128xi1>
    %41 = vector.shape_cast %22 : vector<8x1xf32> to vector<8x1xf32>
    %42 = vector.broadcast %41 : vector<8x1xf32> to vector<8x128xf32>
    %43 = vector.shape_cast %27 : vector<8x1xf32> to vector<8x1xf32>
    %44 = vector.broadcast %43 : vector<8x1xf32> to vector<8x128xf32>
    %45 = arith.select %40, %42, %44 : vector<8x128xi1>, vector<8x128xf32>
    %c64_i32 = arith.constant 64 : i32
    %46 = vector.broadcast %c64_i32 : i32 to vector<1x128xi32>
    %47 = arith.cmpi slt, %7, %46 : vector<1x128xi32>
    %48 = vector.shape_cast %47 : vector<1x128xi1> to vector<1x128xi1>
    %49 = vector.broadcast %48 : vector<1x128xi1> to vector<8x128xi1>
    %50 = arith.select %49, %36, %45 : vector<8x128xi1>, vector<8x128xf32>
    %51 = arith.mulf %50, %0 : vector<8x128xf32>
    %cst = arith.constant dense<0.000000e+00> : vector<8x128xf32>
    %52 = tpu.matmul %51, %1, %cst {dimension_numbers = #tpu.dot_dimension_numbers<[1], [0], [0], [1], [0, 0, 1, 1], [], []>} : vector<8x128xf32>, vector<128x128xf32>, vector<8x128xf32> -> vector<8x128xf32>
    %53 = tpu.iota {dimensions = array<i32: 1>} : vector<1x64xi32>
    %cst_11 = arith.constant 0.000000e+00 : f32
    %54 = vector.broadcast %cst_11 : f32 to vector<8x64xf32>
    %c0_12 = arith.constant 0 : index
    %c0_13 = arith.constant 0 : index
    %55 = vector.load %arg1[%c0_12, %c0_13] : memref<8x8xi32, #tpu.memory_space<vmem>>, vector<8x1xi32>
    %56 = vector.broadcast %53 : vector<1x64xi32> to vector<8x64xi32>
    %57 = vector.broadcast %55 : vector<8x1xi32> to vector<8x64xi32>
    %58 = arith.cmpi eq, %56, %57 : vector<8x64xi32>
    %59 = arith.extui %58 : vector<8x64xi1> to vector<8x64xi32>
    %60 = arith.sitofp %59 : vector<8x64xi32> to vector<8x64xf32>
    %61 = arith.addf %54, %60 : vector<8x64xf32>
    %c0_14 = arith.constant 0 : index
    %c1_15 = arith.constant 1 : index
    %62 = vector.load %arg1[%c0_14, %c1_15] : memref<8x8xi32, #tpu.memory_space<vmem>>, vector<8x1xi32>
    %63 = vector.broadcast %53 : vector<1x64xi32> to vector<8x64xi32>
    %64 = vector.broadcast %62 : vector<8x1xi32> to vector<8x64xi32>
    %65 = arith.cmpi eq, %63, %64 : vector<8x64xi32>
    %66 = arith.extui %65 : vector<8x64xi1> to vector<8x64xi32>
    %67 = arith.sitofp %66 : vector<8x64xi32> to vector<8x64xf32>
    %68 = arith.addf %61, %67 : vector<8x64xf32>
    %c0_16 = arith.constant 0 : index
    %c2_17 = arith.constant 2 : index
    %69 = vector.load %arg1[%c0_16, %c2_17] : memref<8x8xi32, #tpu.memory_space<vmem>>, vector<8x1xi32>
    %70 = vector.broadcast %53 : vector<1x64xi32> to vector<8x64xi32>
    %71 = vector.broadcast %69 : vector<8x1xi32> to vector<8x64xi32>
    %72 = arith.cmpi eq, %70, %71 : vector<8x64xi32>
    %73 = arith.extui %72 : vector<8x64xi1> to vector<8x64xi32>
    %74 = arith.sitofp %73 : vector<8x64xi32> to vector<8x64xf32>
    %75 = arith.addf %68, %74 : vector<8x64xf32>
    %c0_18 = arith.constant 0 : index
    %c3_19 = arith.constant 3 : index
    %76 = vector.load %arg1[%c0_18, %c3_19] : memref<8x8xi32, #tpu.memory_space<vmem>>, vector<8x1xi32>
    %77 = vector.broadcast %53 : vector<1x64xi32> to vector<8x64xi32>
    %78 = vector.broadcast %76 : vector<8x1xi32> to vector<8x64xi32>
    %79 = arith.cmpi eq, %77, %78 : vector<8x64xi32>
    %80 = arith.extui %79 : vector<8x64xi1> to vector<8x64xi32>
    %81 = arith.sitofp %80 : vector<8x64xi32> to vector<8x64xf32>
    %82 = arith.addf %75, %81 : vector<8x64xf32>
    %c0_20 = arith.constant 0 : index
    %c4 = arith.constant 4 : index
    %83 = vector.load %arg1[%c0_20, %c4] : memref<8x8xi32, #tpu.memory_space<vmem>>, vector<8x1xi32>
    %84 = vector.broadcast %53 : vector<1x64xi32> to vector<8x64xi32>
    %85 = vector.broadcast %83 : vector<8x1xi32> to vector<8x64xi32>
    %86 = arith.cmpi eq, %84, %85 : vector<8x64xi32>
    %87 = arith.extui %86 : vector<8x64xi1> to vector<8x64xi32>
    %88 = arith.sitofp %87 : vector<8x64xi32> to vector<8x64xf32>
    %89 = arith.addf %82, %88 : vector<8x64xf32>
    %c0_21 = arith.constant 0 : index
    %c5 = arith.constant 5 : index
    %90 = vector.load %arg1[%c0_21, %c5] : memref<8x8xi32, #tpu.memory_space<vmem>>, vector<8x1xi32>
    %91 = vector.broadcast %53 : vector<1x64xi32> to vector<8x64xi32>
    %92 = vector.broadcast %90 : vector<8x1xi32> to vector<8x64xi32>
    %93 = arith.cmpi eq, %91, %92 : vector<8x64xi32>
    %94 = arith.extui %93 : vector<8x64xi1> to vector<8x64xi32>
    %95 = arith.sitofp %94 : vector<8x64xi32> to vector<8x64xf32>
    %96 = arith.addf %89, %95 : vector<8x64xf32>
    %c0_22 = arith.constant 0 : index
    %c6 = arith.constant 6 : index
    %97 = vector.load %arg1[%c0_22, %c6] : memref<8x8xi32, #tpu.memory_space<vmem>>, vector<8x1xi32>
    %98 = vector.broadcast %53 : vector<1x64xi32> to vector<8x64xi32>
    %99 = vector.broadcast %97 : vector<8x1xi32> to vector<8x64xi32>
    %100 = arith.cmpi eq, %98, %99 : vector<8x64xi32>
    %101 = arith.extui %100 : vector<8x64xi1> to vector<8x64xi32>
    %102 = arith.sitofp %101 : vector<8x64xi32> to vector<8x64xf32>
    %103 = arith.addf %96, %102 : vector<8x64xf32>
    %c0_23 = arith.constant 0 : index
    %c7 = arith.constant 7 : index
    %104 = vector.load %arg1[%c0_23, %c7] : memref<8x8xi32, #tpu.memory_space<vmem>>, vector<8x1xi32>
    %105 = vector.broadcast %53 : vector<1x64xi32> to vector<8x64xi32>
    %106 = vector.broadcast %104 : vector<8x1xi32> to vector<8x64xi32>
    %107 = arith.cmpi eq, %105, %106 : vector<8x64xi32>
    %108 = arith.extui %107 : vector<8x64xi1> to vector<8x64xi32>
    %109 = arith.sitofp %108 : vector<8x64xi32> to vector<8x64xf32>
    %110 = arith.addf %103, %109 : vector<8x64xf32>
    %cst_24 = arith.constant dense<0.000000e+00> : vector<8x128xf32>
    %111 = tpu.matmul %110, %3, %cst_24 {dimension_numbers = #tpu.dot_dimension_numbers<[1], [0], [0], [1], [0, 0, 1, 1], [], []>} : vector<8x64xf32>, vector<64x128xf32>, vector<8x128xf32> -> vector<8x128xf32>
    %112 = arith.addf %52, %111 : vector<8x128xf32>
    %cst_25 = arith.constant dense<0.000000e+00> : vector<8x128xf32>
    %113 = tpu.matmul %112, %2, %cst_25 {dimension_numbers = #tpu.dot_dimension_numbers<[1], [0], [0], [1], [0, 0, 1, 1], [], []>} : vector<8x128xf32>, vector<128x128xf32>, vector<8x128xf32> -> vector<8x128xf32>
    %114 = arith.mulf %112, %112 : vector<8x128xf32>
    %cst_26 = arith.constant dense<0.000000e+00> : vector<8x128xf32>
    %115 = tpu.matmul %114, %2, %cst_26 {dimension_numbers = #tpu.dot_dimension_numbers<[1], [0], [0], [1], [0, 0, 1, 1], [], []>} : vector<8x128xf32>, vector<128x128xf32>, vector<8x128xf32> -> vector<8x128xf32>
    %cst_27 = arith.constant 3.125000e-02 : f32
    %116 = vector.broadcast %cst_27 : f32 to vector<8x128xf32>
    %117 = arith.mulf %113, %116 : vector<8x128xf32>
    %cst_28 = arith.constant 3.125000e-02 : f32
    %118 = vector.broadcast %cst_28 : f32 to vector<8x128xf32>
    %119 = arith.mulf %115, %118 : vector<8x128xf32>
    %120 = arith.mulf %117, %117 : vector<8x128xf32>
    %121 = arith.subf %119, %120 : vector<8x128xf32>
    %cst_29 = arith.constant 0.000000e+00 : f32
    %122 = vector.broadcast %cst_29 : f32 to vector<8x128xf32>
    %123 = arith.maximumf %121, %122 : vector<8x128xf32>
    %cst_30 = arith.constant 9.99999996E-13 : f32
    %124 = vector.broadcast %cst_30 : f32 to vector<8x128xf32>
    %125 = arith.addf %123, %124 : vector<8x128xf32>
    %126 = math.rsqrt %125 : vector<8x128xf32>
    %127 = arith.subf %112, %117 : vector<8x128xf32>
    %128 = vector.broadcast %5 : vector<1x128xf32> to vector<8x128xf32>
    %129 = arith.mulf %126, %128 : vector<8x128xf32>
    %130 = arith.mulf %127, %129 : vector<8x128xf32>
    %131 = vector.broadcast %6 : vector<1x128xf32> to vector<8x128xf32>
    %132 = arith.addf %130, %131 : vector<8x128xf32>
    %c0_31 = arith.constant 0 : index
    %c0_32 = arith.constant 0 : index
    %133 = vector.load %arg4[%c0_31, %c0_32] : memref<8x128xf32, #tpu.memory_space<vmem>>, vector<8x128xf32>
    tpu.vector_store %arg4[%c0_31, %c0_32], %132 {strides = array<i32>} : memref<8x128xf32, #tpu.memory_space<vmem>>, vector<8x128xf32>,
    return
  }
  func.func @transform_0(%arg0: i32) -> (i32, i32) {
    %c0_i32 = arith.constant 0 : i32
    %c0_i32_0 = arith.constant 0 : i32
    return %arg0, %c0_i32 : i32, i32
  }
  func.func @transform_1(%arg0: i32) -> (i32, i32) {
    %c0_i32 = arith.constant 0 : i32
    %c0_i32_0 = arith.constant 0 : i32
    return %arg0, %c0_i32 : i32, i32
  }
  func.func @transform_2(%arg0: i32) -> (i32, i32) {
    %c0_i32 = arith.constant 0 : i32
    %c0_i32_0 = arith.constant 0 : i32
    %c0_i32_1 = arith.constant 0 : i32
    return %c0_i32, %c0_i32_0 : i32, i32
  }
  func.func @transform_3(%arg0: i32) -> (i32, i32) {
    %c0_i32 = arith.constant 0 : i32
    %c0_i32_0 = arith.constant 0 : i32
    return %arg0, %c0_i32 : i32, i32
  }
}

</mosaic_0001>

<bundles_post_ra>
// kernel: tpu_custom_call.1
= control target key start
LH: loop header
LB: loop body
LE: loop exit
PB: predicated region body
PF: predicated region fallthrough
CT: control target
= control target key end

     0   :  { %8 = vsyncpa [#allocation3], 0  ;;  %s975_s0 = inlined_call_operand.hbm [shape: s32[8,8], index: 0, kind: input, shape index: {}]   ;;  %s976_s1 = inlined_call_operand.hbm [shape: f32[8,128], index: 1, kind: input, shape index: {}]   ;;  %s977_s2 = inlined_call_operand.hbm [shape: f32[328,128], index: 2, kind: input, shape index: {}]   ;;  %s978_s3 = inlined_call_operand.hbm [shape: f32[8,128], index: 3, kind: output, shape index: {}]  }
   0x1   :  { %9 = vsyncpa [#allocation6], 0 }
   0x2   :  { %10 = vsyncpa [#allocation4], 0  ;;  %s831_s12 = smov [#allocation5]   ;;  %s832_s14 = smov [#allocation2]  }
   0x3   :  { %s27_s13 = sshll.u32 %s831_s12, 4  ;;  %s17_s15 = sshll.u32 %s832_s14, 4  ;;  %s28_s13 = int_to_ptr.vmem [resolvable:$true] %s27_s13  ;;  %s18_s15 = int_to_ptr.vmem [resolvable:$true] %s17_s15 }
   0x4   :  { %s753_s16 = scalar_lea.vmem %s28_s13, 128  ;;  %p758_p1 = scmp.lt.s32.totalorder %s28_s13, %s28_s13 }
   0x5   :  { %p754_p0 = scmp.ne.s32.totalorder %s28_s13, %s753_s16  ;;  %p759_p2 = scmp.lt.s32.totalorder %s753_s16, %s753_s16 }
   0x7   :  { %p760_p3 = por %p759_p2, %p758_p1 }
   0x9   :  { %p761_p4 = pnand %p760_p3, %p754_p0 }
   0xb   :  { %764 = shalt.err (!%p761_p4)
}
   0xc   :  { %30 = dma.hbm_to_vmem [thread:$0]  %s976_s1, 128, %s28_s13, [#allocation6]  }
   0xd   :  { %s773_s19 = scalar_lea.vmem %s18_s15, 128  ;;  %p778_p6 = scmp.lt.s32.totalorder %s18_s15, %s18_s15 }
   0xe   :  { %p774_p5 = scmp.ne.s32.totalorder %s18_s15, %s773_s19  ;;  %p779_p7 = scmp.lt.s32.totalorder %s773_s19, %s773_s19 }
  0x10   :  { %p780_p8 = por %p779_p7, %p778_p6 }
  0x12   :  { %p781_p9 = pnand %p780_p8, %p774_p5 }
  0x14   :  { %784 = shalt.err (!%p781_p9)
}
  0x15   :  { %20 = dma.hbm_to_vmem [thread:$0]  %s975_s0, 128, %s18_s15, [#allocation3]  }
  0x16   :  { %s833_s22 = smov [#allocation7]  }
  0x17   :  { %s36_s23 = sshll.u32 %s833_s22, 4  ;;  %s37_s23 = int_to_ptr.vmem [resolvable:$true] %s36_s23 }
  0x18   :  { %s793_s24 = scalar_lea.vmem %s37_s23, 5248  ;;  %p798_p11 = scmp.lt.s32.totalorder %s37_s23, %s37_s23 }
  0x19   :  { %p794_p10 = scmp.ne.s32.totalorder %s37_s23, %s793_s24  ;;  %p799_p12 = scmp.lt.s32.totalorder %s793_s24, %s793_s24 }
  0x1b   :  { %p800_p13 = por %p799_p12, %p798_p11 }
  0x1d   :  { %p801_p0 = pnand %p800_p13, %p794_p10 }
  0x1f   :  { %804 = shalt.err (!%p801_p0)
}
  0x20   :  { %s834_s1 = smov 128   ;;  %s835_s25 = smov 8  }
  0x21   :  { %42 = dma.hbm_to_vmem [thread:$0]  %s977_s2, 5248, %s37_s23, [#allocation6], %s834_s1, %s834_s1, %s835_s25  }
  0x22   :  { %825 = dma.done.wait [#allocation3], 128  }
  0x23   :  { %826 = vsyncadd [#allocation3], 4294967168 }
  0x24   :  { %827 = dma.done.wait [#allocation6], 5376  }
  0x25   :  { %828 = vsyncadd [#allocation6], 4294961920  ;;  %v836_v0 = vmov 2   ;;  %v837_v1 = vmov 0   ;;  %v838_v2 = vmov 0.0   ;;  %v879_v3 = vld [vmem:[#allocation2] sm:$0xff]  ;;  %v94_v40 = vlaneseq }
  0x26   :  { %733 = vset.pattern.permute.xlu1 %v836_v0  ;;  %732 = vset.pattern.permute.xlu0 %v837_v1  ;;  %v68_v4 = vld [vmem:[#allocation7 + $0x78] sm:$0xff]  ;;  %v67_v5 = vld [vmem:[#allocation7 + $0x70] sm:$0xff]  ;;  %v839_v6 = vmov 3   ;;  %v840_v7 = vmov 5   ;;  %v66_v8 = vld [vmem:[#allocation7 + $0x68] sm:$0xff]  ;;  %vm100_vm0 = vcmp.eq.s32.totalorder %v879_v3, 29 }
  0x27   :  { %611 = vmatprep.subr.mxu1 %v838_v2  ;;  %592 = vmatprep.subr.mxu0 %v838_v2  ;;  %v92_v9 = vld [vmem:[#allocation7 + $0x138] sm:$0xff]  ;;  %v65_v10 = vld [vmem:[#allocation7 + $0x60] sm:$0xff]  ;;  %v91_v11 = vld [vmem:[#allocation7 + $0x130] sm:$0xff]  ;;  %v841_v12 = vmov 4   ;;  %v842_v13 = vmov 1   ;;  %v520_v16 = vsel %vm100_vm0, 1.0, %v838_v2 }
  0x28   :  { %157 = vperm.xlu1 %733, %v879_v3   ;;  %143 = vperm.xlu0 %732, %v879_v3   ;;  %v64_v14 = vld [vmem:[#allocation7 + $0x58] sm:$0xff]  ;;  %v90_v15 = vld [vmem:[#allocation7 + $0x128] sm:$0xff]  ;;  %v63_v17 = vld [vmem:[#allocation7 + $0x50] sm:$0xff]  ;;  %v843_v18 = vmov 6   ;;  %vm97_vm1 = vcmp.eq.s32.totalorder %v879_v3, 13  ;;  %v844_v22 = vmov 7  }
  0x29   :  { %612 = vmatpush3.msra.mxu1 %v68_v4  ;;  %593 = vmatpush3.msra.mxu0 %v92_v9  ;;  %v89_v19 = vld [vmem:[#allocation7 + $0x120] sm:$0xff]  ;;  %v62_v20 = vld [vmem:[#allocation7 + $0x48] sm:$0xff]  ;;  %v519_v21 = vsel %vm97_vm1, 1.0, %v838_v2  ;;  %vm103_vm2 = vcmp.eq.s32.totalorder %v879_v3, 45  ;;  %v88_v24 = vld [vmem:[#allocation7 + $0x118] sm:$0xff]  ;;  %vm106_vm3 = vcmp.eq.s32.totalorder %v879_v3, 61 }
  0x2a   :  { %613 = vmatprep.subr.mxu1 %v838_v2  ;;  %594 = vmatprep.subr.mxu0 %v838_v2  ;;  %v61_v23 = vld [vmem:[#allocation7 + $0x40] sm:$0xff]  ;;  %v60_v25 = vld [vmem:[#allocation7 + $0x38] sm:$0xff]  ;;  %v521_v26 = vsel %vm103_vm2, 1.0, %v838_v2  ;;  %v87_v27 = vld [vmem:[#allocation7 + $0x110] sm:$0xff]  ;;  %v522_v31 = vsel %vm106_vm3, 1.0, %v838_v2  ;;  %vm845_vm4 = vmmov 0  }
  0x2b   :  { %614 = vmatpush3.msra.mxu1 %v67_v5  ;;  %595 = vmatpush3.msra.mxu0 %v91_v11  ;;  %v59_v28 = vld [vmem:[#allocation7 + $0x30] sm:$0xff]  ;;  %v86_v29 = vld [vmem:[#allocation7 + $0x108] sm:$0xff]  ;;  %v85_v32 = vld [vmem:[#allocation7 + $0x100] sm:$0xff]  ;;  %v95_v43 = vand.u32 127, %v94_v40  ;;  %vm198_vm13 = vcmask 523264   ;;  %s846_s0 = smov [#allocation8]  }
  0x2c   :  { %734 = vset.pattern.permute.xlu1 %v839_v6  ;;  %736 = vset.pattern.permute.xlu0 %v840_v7  ;;  %v58_v30 = vld [vmem:[#allocation7 + $0x28] sm:$0xff]  ;;  %v57_v33 = vld [vmem:[#allocation7 + $0x20] sm:$0xff]  ;;  %v56_v34 = vld [vmem:[#allocation7 + $0x18] sm:$0xff]  ;;  %s509_s2 = sshll.u32 %s846_s0, 4  ;;  %s510_s2 = int_to_ptr.vmem [resolvable:$true] %s509_s2 }
  0x2d   :  { %164 = vperm.xlu1 %734, %v879_v3   ;;  %178 = vperm.xlu0 %736, %v879_v3   ;;  %v55_v35 = vld [vmem:[#allocation7 + $0x10] sm:$0xff]  ;;  %v54_v36 = vld [vmem:[#allocation7 + $0x8] sm:$0xff]  ;;  %v53_v37 = vld [vmem:[#allocation7] sm:$0xff]  ;;  %vm109_vm14 = vcmp.lt.s32.totalorder %v95_v43, 32  ;;  %vm123_vm15 = vcmp.lt.s32.totalorder %v95_v43, 96  ;;  %vm137_vm0 = vcmp.lt.s32.totalorder %v95_v43, 64  ;;  %p810_p2 = scmp.lt.s32.totalorder %s510_s2, %s510_s2 }
  0x2e   :  { %615 = vmatprep.subr.mxu1 %v838_v2  ;;  %596 = vmatprep.subr.mxu0 %v838_v2  ;;  %v83_v4 = vld [vmem:[#allocation7 + $0xf0] sm:$0xff]  ;;  %v82_v5 = vld [vmem:[#allocation7 + $0xe8] sm:$0xff]  ;;  %v52_v7 = vld [vmem:[#allocation5] sm:$0xff]  ;;  %s805_s28 = scalar_lea.vmem %s510_s2, 128 }
  0x2f   :  { %616 = vmatpush3.msra.mxu1 %v66_v8  ;;  %597 = vmatpush3.msra.mxu0 %v90_v15  ;;  %v78_v15 = vld [vmem:[#allocation7 + $0xc8] sm:$0xff]  ;;  %p806_p1 = scmp.ne.s32.totalorder %s510_s2, %s805_s28  ;;  %p811_p3 = scmp.lt.s32.totalorder %s805_s28, %s805_s28 }
  0x30   :  { %617 = vmatprep.subr.mxu1 %v838_v2  ;;  %598 = vmatprep.subr.mxu0 %v838_v2 }
  0x31   :  { %735 = vset.pattern.permute.xlu1 %v841_v12  ;;  %737 = vset.pattern.permute.xlu0 %v842_v13  ;;  %v80_v13 = vld [vmem:[#allocation7 + $0xd8] sm:$0xff]  ;;  %p812_p4 = por %p811_p3, %p810_p2 }
  0x32   :  { %171 = vperm.xlu1 %735, %v879_v3   ;;  %150 = vperm.xlu0 %737, %v879_v3  }
  0x33   :  { %618 = vmatpush3.msra.mxu1 %v65_v10  ;;  %599 = vmatpush3.msra.mxu0 %v89_v19  ;;  %v81_v10 = vld [vmem:[#allocation7 + $0xe0] sm:$0xff]  ;;  %v74_v19 = vld [vmem:[#allocation7 + $0xa8] sm:$0xff]  ;;  %p813_p5 = pnand %p812_p4, %p806_p1 }
  0x34   :  { %619 = vmatprep.subr.mxu1 %v838_v2  ;;  %600 = vmatprep.subr.mxu0 %v838_v2 }
  0x35   :  { %620 = vmatpush3.msra.mxu1 %v64_v14  ;;  %601 = vmatpush3.msra.mxu0 %v88_v24  ;;  %v79_v14 = vld [vmem:[#allocation7 + $0xd0] sm:$0xff]  ;;  %v69_v24 = vld [vmem:[#allocation7 + $0x80] sm:$0xff] }
  0x36   :  { %738 = vset.pattern.permute.xlu1 %v843_v18  ;;  %119 = vperm.xlu0 %737, %v520_v16   ;;  %v77_v16 = vld [vmem:[#allocation7 + $0xc0] sm:$0xff]  ;;  %v75_v18 = vld [vmem:[#allocation7 + $0xb0] sm:$0xff] }
  0x37   :  { %185 = vperm.xlu1 %738, %v879_v3   ;;  %621 = vmatprep.subr.mxu1 %v838_v2 }
  0x38   :  { %622 = vmatpush3.msra.mxu1 %v63_v17  ;;  %602 = vmatprep.subr.mxu0 %v838_v2  ;;  %v76_v17 = vld [vmem:[#allocation7 + $0xb8] sm:$0xff] }
  0x39   :  { %623 = vmatprep.subr.mxu1 %v838_v2  ;;  %603 = vmatpush3.msra.mxu0 %v87_v27 }
  0x3a   :  { %742 = vset.pattern.permute.xlu0 %v844_v22  ;;  %624 = vmatpush3.msra.mxu1 %v62_v20  ;;  %v73_v20 = vld [vmem:[#allocation7 + $0xa0] sm:$0xff]  ;;  %v71_v22 = vld [vmem:[#allocation7 + $0x90] sm:$0xff] }
  0x3b   :  { %739 = vset.pattern.permute.xlu1 %v837_v1  ;;  %192 = vperm.xlu0 %742, %v879_v3   ;;  %v84_v3 = vld [vmem:[#allocation7 + $0xf8] sm:$0xff] }
  0x3c   :  { %114 = vperm.xlu1 %739, %v519_v21   ;;  %625 = vmatprep.subr.mxu1 %v838_v2  ;;  %v72_v21 = vld [vmem:[#allocation7 + $0x98] sm:$0xff] }
  0x3d   :  { %626 = vmatpush3.msra.mxu1 %v61_v23  ;;  %604 = vmatprep.subr.mxu0 %v838_v2  ;;  %v70_v23 = vld [vmem:[#allocation7 + $0x88] sm:$0xff] }
  0x3e   :  { %627 = vmatprep.subr.mxu1 %v838_v2  ;;  %605 = vmatpush3.msra.mxu0 %v86_v29 }
  0x3f   :  { %628 = vmatpush3.msra.mxu1 %v60_v25  ;;  %606 = vmatprep.subr.mxu0 %v838_v2 }
  0x40   :  { %740 = vset.pattern.permute.xlu1 %v836_v0  ;;  %629 = vmatprep.subr.mxu1 %v838_v2 }
  0x41   :  { %128 = vperm.xlu1 %740, %v521_v26   ;;  %630 = vmatpush3.msra.mxu1 %v59_v28 }
  0x42   :  { %631 = vmatprep.subr.mxu1 %v838_v2  ;;  %607 = vmatpush3.msra.mxu0 %v85_v32 }
  0x43   :  { %632 = vmatpush3.msra.mxu1 %v58_v30  ;;  %608 = vmatprep.mubr.msk.f32.mxu0 %vm845_vm4, %v838_v2 }
  0x44   :  { %633 = vmatprep.subr.mxu1 %v838_v2  ;;  %643 = vmatprep.mubr.msk.f32.mxu1 %vm845_vm4, %v838_v2 }
  0x45   :  { %741 = vset.pattern.permute.xlu1 %v839_v6  ;;  %634 = vmatpush3.msra.mxu1 %v57_v33 }
  0x46   :  { %133 = vperm.xlu1 %741, %v522_v31   ;;  %635 = vmatprep.subr.mxu1 %v838_v2 }
  0x47   :  { %636 = vmatpush3.msra.mxu1 %v56_v34  ;;  %646 = vmatprep.subr.mxu0 %v838_v2 }
  0x48   :  { %637 = vmatprep.subr.mxu1 %v838_v2 }
  0x49   :  { %638 = vmatpush3.msra.mxu1 %v55_v35 }
  0x4a   :  { %639 = vmatprep.subr.mxu1 %v838_v2 }
  0x4b   :  { %640 = vmatpush3.msra.mxu1 %v54_v36 }
  0x4c   :  { %641 = vmatprep.subr.mxu1 %v838_v2 }
  0x4d   :  { %642 = vmatpush3.msra.mxu1 %v53_v37 }
  0x4e   :  { %681 = vmatprep.subr.mxu1 %v838_v2 }
  0xa3   :  { %v158_v38 = vpop.permute.xlu1 %157  ;;  %v144_v39 = vpop.permute.xlu0 %143 }
  0xa4   :  { %vm145_vm5 = vcmp.eq.s32.totalorder %v95_v43, %v144_v39  ;;  %vm159_vm6 = vcmp.eq.s32.totalorder %v95_v43, %v158_v38 }
  0xa5   :  { %v523_v46 = vsel %vm145_vm5, 1.0, %v838_v2  ;;  %v525_v49 = vsel %vm159_vm6, 1.0, %v838_v2 }
  0xa8   :  { %v165_v41 = vpop.permute.xlu1 %164  ;;  %v179_v42 = vpop.permute.xlu0 %178 }
  0xa9   :  { %vm166_vm8 = vcmp.eq.s32.totalorder %v95_v43, %v165_v41  ;;  %vm180_vm10 = vcmp.eq.s32.totalorder %v95_v43, %v179_v42  ;;  %v492_v41 = vshrl.u32 %v94_v40, 7 }
  0xaa   :  { %v526_v53 = vsel %vm166_vm8, 1.0, %v838_v2  ;;  %v528_v58 = vsel %vm180_vm10, 1.0, %v838_v2 }
  0xab   :  { %v493_v42 = vsub.s32 0, %v492_v41 }
  0xad   :  { %v172_v44 = vpop.permute.xlu1 %171  ;;  %v151_v45 = vpop.permute.xlu0 %150 }
  0xae   :  { %vm152_vm7 = vcmp.eq.s32.totalorder %v95_v43, %v151_v45  ;;  %vm173_vm9 = vcmp.eq.s32.totalorder %v95_v43, %v172_v44  ;;  %v499_v45 = vsub.s32 1, %v492_v41 }
  0xaf   :  { %v524_v47 = vsel %vm152_vm7, 1.0, %v838_v2  ;;  %v527_v55 = vsel %vm173_vm9, 1.0, %v838_v2 }
  0xb0   :  { %v155_v48 = vadd.f32 %v524_v47, %v523_v46 }
  0xb1   :  { %v120_v50 = vpop.permute.xlu0 %119 }
  0xb2   :  { %v162_v51 = vadd.f32 %v525_v49, %v155_v48  ;;  %v186_v52 = vpop.permute.xlu1 %185 }
  0xb3   :  { %vm187_vm11 = vcmp.eq.s32.totalorder %v95_v43, %v186_v52 }
  0xb4   :  { %v169_v54 = vadd.f32 %v526_v53, %v162_v51  ;;  %v529_v61 = vsel %vm187_vm11, 1.0, %v838_v2 }
  0xb6   :  { %v176_v56 = vadd.f32 %v527_v55, %v169_v54  ;;  %v193_v57 = vpop.permute.xlu0 %192 }
  0xb7   :  { %v115_v59 = vpop.permute.xlu1 %114  ;;  %vm194_vm12 = vcmp.eq.s32.totalorder %v95_v43, %v193_v57  ;;  %v93_v43 = vld [vmem:[#allocation7 + $0x140] sm:$0xff] }
  0xb8   :  { %v183_v60 = vadd.f32 %v528_v58, %v176_v56  ;;  %v530_v62 = vsel %vm194_vm12, 1.0, %v838_v2  ;;  %v122_v8 = vsel %vm109_vm14, %v115_v59, %v120_v50  ;;  %v494_v44 = vrot.slane %v93_v43, %v493_v42 }
  0xb9   :  { %v500_v49 = vrot.slane %v93_v43, %v499_v45 }
  0xba   :  { %v190_v63 = vadd.f32 %v529_v61, %v183_v60 }
  0xbc   :  { %v197_v0 = vadd.f32 %v530_v62, %v190_v63  ;;  %v129_v1 = vpop.permute.xlu1 %128 }
  0xbe   :  { %609 = vmatmul.mubr.msk.f32.vlgmr.msra.gmra.mxu0 %vm198_vm13, %v197_v0 }
  0xbf   :  { %647 = vmatpush3.msra.mxu0 %v84_v3  ;;  %678 = vmatprep.mubr.msk.f32.mxu0 %vm845_vm4, %v838_v2 }
  0xc0   :  { %648 = vmatprep.subr.mxu0 %v838_v2 }
  0xc1   :  { %v134_v6 = vpop.permute.xlu1 %133  ;;  %649 = vmatpush3.msra.mxu0 %v83_v4 }
  0xc2   :  { %v136_v9 = vsel %vm123_vm15, %v129_v1, %v134_v6  ;;  %650 = vmatprep.subr.mxu0 %v838_v2 }
  0xc3   :  { %v140_v11 = vsel %vm137_vm0, %v122_v8, %v136_v9  ;;  %651 = vmatpush3.msra.mxu0 %v82_v5 }
  0xc4   :  { %v141_v12 = vmul.f32 %v140_v11, %v52_v7  ;;  %652 = vmatprep.subr.mxu0 %v838_v2 }
  0xc5   :  { %653 = vmatpush3.msra.mxu0 %v81_v10 }
  0xc6   :  { %644 = vmatmul.mubr.f32.vlgmr.msra.gmra.mxu1 %v141_v12  ;;  %654 = vmatprep.subr.mxu0 %v838_v2 }
  0xc7   :  { %682 = vmatpush3.msra.mxu1 %v84_v3  ;;  %655 = vmatpush3.msra.mxu0 %v80_v13 }
  0xc8   :  { %683 = vmatprep.subr.mxu1 %v838_v2  ;;  %656 = vmatprep.subr.mxu0 %v838_v2 }
  0xc9   :  { %684 = vmatpush3.msra.mxu1 %v83_v4  ;;  %657 = vmatpush3.msra.mxu0 %v79_v14 }
  0xca   :  { %685 = vmatprep.subr.mxu1 %v838_v2  ;;  %658 = vmatprep.subr.mxu0 %v838_v2 }
  0xcb   :  { %686 = vmatpush3.msra.mxu1 %v82_v5  ;;  %659 = vmatpush3.msra.mxu0 %v78_v15 }
  0xcc   :  { %687 = vmatprep.subr.mxu1 %v838_v2  ;;  %660 = vmatprep.subr.mxu0 %v838_v2 }
  0xcd   :  { %688 = vmatpush3.msra.mxu1 %v81_v10  ;;  %661 = vmatpush3.msra.mxu0 %v77_v16 }
  0xce   :  { %689 = vmatprep.subr.mxu1 %v838_v2  ;;  %662 = vmatprep.subr.mxu0 %v838_v2 }
  0xcf   :  { %690 = vmatpush3.msra.mxu1 %v80_v13  ;;  %663 = vmatpush3.msra.mxu0 %v76_v17 }
  0xd0   :  { %691 = vmatprep.subr.mxu1 %v838_v2  ;;  %664 = vmatprep.subr.mxu0 %v838_v2 }
  0xd1   :  { %692 = vmatpush3.msra.mxu1 %v79_v14  ;;  %665 = vmatpush3.msra.mxu0 %v75_v18 }
  0xd2   :  { %693 = vmatprep.subr.mxu1 %v838_v2  ;;  %666 = vmatprep.subr.mxu0 %v838_v2 }
  0xd3   :  { %694 = vmatpush3.msra.mxu1 %v78_v15  ;;  %713 = vmatprep.mubr.msk.f32.mxu1 %vm845_vm4, %v838_v2 }
  0xd4   :  { %695 = vmatprep.subr.mxu1 %v838_v2  ;;  %667 = vmatpush3.msra.mxu0 %v74_v19 }
  0xd5   :  { %696 = vmatpush3.msra.mxu1 %v77_v16  ;;  %668 = vmatprep.subr.mxu0 %v838_v2 }
  0xd6   :  { %697 = vmatprep.subr.mxu1 %v838_v2  ;;  %669 = vmatpush3.msra.mxu0 %v73_v20 }
  0xd7   :  { %698 = vmatpush3.msra.mxu1 %v76_v17  ;;  %670 = vmatprep.subr.mxu0 %v838_v2 }
  0xd8   :  { %699 = vmatprep.subr.mxu1 %v838_v2  ;;  %671 = vmatpush3.msra.mxu0 %v72_v21 }
  0xd9   :  { %700 = vmatpush3.msra.mxu1 %v75_v18  ;;  %672 = vmatprep.subr.mxu0 %v838_v2 }
  0xda   :  { %701 = vmatprep.subr.mxu1 %v838_v2  ;;  %673 = vmatpush3.msra.mxu0 %v71_v22 }
  0xdb   :  { %702 = vmatpush3.msra.mxu1 %v74_v19  ;;  %674 = vmatprep.subr.mxu0 %v838_v2 }
  0xdc   :  { %703 = vmatprep.subr.mxu1 %v838_v2  ;;  %675 = vmatpush3.msra.mxu0 %v70_v23 }
  0xdd   :  { %704 = vmatpush3.msra.mxu1 %v73_v20  ;;  %676 = vmatprep.subr.mxu0 %v838_v2 }
  0xde   :  { %705 = vmatprep.subr.mxu1 %v838_v2  ;;  %677 = vmatpush3.msra.mxu0 %v69_v24 }
  0xdf   :  { %706 = vmatpush3.msra.mxu1 %v72_v21 }
  0xe0   :  { %707 = vmatprep.subr.mxu1 %v838_v2 }
  0xe1   :  { %708 = vmatpush3.msra.mxu1 %v71_v22 }
  0xe2   :  { %709 = vmatprep.subr.mxu1 %v838_v2 }
  0xe3   :  { %710 = vmatpush3.msra.mxu1 %v70_v23 }
  0xe4   :  { %711 = vmatprep.subr.mxu1 %v838_v2 }
  0xe5   :  { %712 = vmatpush3.msra.mxu1 %v69_v24 }
 0x17e   :  { %v268_v25 = vpop.f32.mrf.mxu0 }
 0x180   :  { %v610_v26 = vpop.f32.mrf.mxu0 }
 0x186   :  { %v338_v27 = vpop.f32.mrf.mxu1 }
 0x187   :  { %v339_v28 = vadd.f32 %v338_v27, %v268_v25 }
 0x188   :  { %v645_v29 = vpop.f32.mrf.mxu1 }
 0x189   :  { %v412_v30 = vmul.f32 %v339_v28, %v339_v28  ;;  %679 = vmatmul.mubr.f32.vlgmr.msra.gmra.mxu0 %v339_v28 }
 0x18b   :  { %714 = vmatmul.mubr.f32.vlgmr.msra.gmra.mxu1 %v412_v30 }
 0x249   :  { %v408_v31 = vpop.f32.mrf.mxu0 }
 0x24a   :  { %v483_v32 = vmul.f32 0.03125, %v408_v31 }
 0x24b   :  { %v680_v33 = vpop.f32.mrf.mxu0  ;;  %v479_v34 = vpop.f32.mrf.mxu1 }
 0x24c   :  { %v485_v35 = vmul.f32 %v483_v32, %v483_v32  ;;  %v484_v36 = vmul.f32 0.03125, %v479_v34  ;;  %v490_v47 = vsub.f32 %v339_v28, %v483_v32 }
 0x24d   :  { %v715_v37 = vpop.f32.mrf.mxu1 }
 0x24e   :  { %v486_v38 = vsub.f32 %v484_v36, %v485_v35 }
 0x250   :  { %v487_v39 = vmax.f32 %v486_v38, 0.0 }
 0x252   :  { %v488_v2 = vadd.f32 1e-12, %v487_v39 }
 0x254   :  { %743 = vrsqrt.f32 %v488_v2 }
 0x261   :  { %v744_v46 = vpop.eup %743 }
 0x262   :  { %v495_v48 = vmul.f32 %v744_v46, %v494_v44 }
 0x264   :  { %v496_v50 = vmul.f32 %v495_v48, %v490_v47 }
 0x266   :  { %v501_v51 = vadd.f32 %v500_v49, %v496_v50 }
 0x268   :  { %502 = vst [vmem:[#allocation8] sm:$0xff] %v501_v51 }
 0x269   :  { %816 = shalt.err (!%p813_p5)
}
 0x26a   :  { %512 = dma.vmem_to_hbm [thread:$0]  %s510_s2, 128, %s978_s3, [#allocation4]  }
 0x26b   :  { %829 = dma.done.wait [#allocation4], 128  }
 0x26c   :  { %830 = vsyncadd [#allocation4], 4294967168 }
 0x26d   :  { %516 = vsyncpa [#allocation3], 1 }
 0x26e   :  { %517 = vsyncpa [#allocation6], 1 }
 0x26f   :  { %518 = vsyncpa [#allocation4], 1 }

</bundles_post_ra>
